<compile_context>
chip_gen: v5e
topology: v5e:2x2
jax: 0.10.0
libtpu: 0.0.40
codegen_flags: <defaults>
</compile_context>

<pallas_src>
import math
from functools import partial

import jax
import jax.numpy as jnp
from jax.experimental import pallas as pl
from jax.experimental.pallas import tpu as pltpu

LN2 = 0.69314718  # matches the constant used in the PyTorch rbf()


def _round_up(x, m):
    return (x + m - 1) // m * m


# ---------------------------------------------------------------------------
# Host-side setup helpers (mirrors RBF_euclidean.__init__)
# ---------------------------------------------------------------------------
def make_grid(domain_min, domain_max, n):
    axes = [jnp.linspace(domain_min[i], domain_max[i], n[i], dtype=jnp.float32)
            for i in range(len(domain_min))]
    mesh = jnp.stack(jnp.meshgrid(*axes, indexing="ij"), axis=-1)
    return mesh.reshape(-1, len(domain_min))  # [G, 3]


def pairwise_dist(a, b):
    return jnp.linalg.norm(a[:, None, :] - b[None, :, :], axis=-1)


def rbf_host(x, width):
    return jnp.exp(-(x ** 2 / (width ** 2 / LN2)))


def make_rbf_euclidean_params(key, domain_min, domain_max, n, codomain_dim):
    grid = make_grid(domain_min, domain_max, n)                  # [G, 3]
    weight = jax.random.normal(key, (grid.shape[0], codomain_dim),
                               dtype=jnp.float32)                # [G, C]
    d = pairwise_dist(grid, grid)                                # [G, G]
    width = jnp.sort(d, axis=-1)[:, 1].mean()                    # nearest-neighbor mean
    m = rbf_host(d, width)                                       # [G, G]
    coeffs = jnp.linalg.solve(m, weight)                         # [G, C]
    return grid, float(width), coeffs


# ---------------------------------------------------------------------------
# Pallas kernel: fused (RBF_x @ coeffs_x) * (RBF_R @ coeffs_R), edges on lanes
# ---------------------------------------------------------------------------
def _rbf_se3_kernel(ct_ref, g_ref, a_ref, o_ref, *, gp, sqrt_scales):
    # ct_ref : [6, tE]        edge coords (rows 0:3 translation, 3:6 rotation)
    # g_ref  : [2*gp, 3]      grids, pre-scaled by sqrt(LN2)/width, zero-padded
    # a_ref  : [2C, 2*gp]     block-diagonal transposed coeffs (padded cols = 0)
    # o_ref  : [C, tE]        output tile (lane-dense)
    d2_parts = []
    for b in range(2):                       # 0: translation branch, 1: rotation branch
        ss = sqrt_scales[b]
        acc = None
        for k in range(3):
            ck = ct_ref[3 * b + k: 3 * b + k + 1, :] * ss        # [1, tE]
            gk = g_ref[b * gp: (b + 1) * gp, k: k + 1]           # [gp, 1]
            diff = gk - ck                                        # [gp, tE] (VPU broadcast)
            sq = diff * diff
            acc = sq if acc is None else acc + sq
        d2_parts.append(acc)

    # One lane-dense exp over both branches: [2*gp, tE]
    p = jnp.exp(-jnp.concatenate(d2_parts, axis=0))

    # Single block-diagonal projection on the MXU: [2C, 2gp] @ [2gp, tE] -> [2C, tE]
    y = jnp.dot(a_ref[...], p, preferred_element_type=jnp.float32)

    c = y.shape[0] // 2
    o_ref[...] = (y[:c, :] * y[c:, :]).astype(o_ref.dtype)


def rbf_se3_forward(edge_attr_relpos_se3, params, *, tile_e=512,
                    out_dtype=jnp.float32):
    grid_x, width_x, coeffs_x = params["x"]
    grid_R, width_R, coeffs_R = params["R"]

    E = edge_attr_relpos_se3.shape[0]
    C = coeffs_x.shape[1]
    G = grid_x.shape[0]
    assert grid_R.shape[0] == G and coeffs_R.shape[1] == C

    # Fold the RBF width into a sqrt-scale applied to both grid and coords.
    ss_x = math.sqrt(LN2 / (width_x ** 2))
    ss_R = math.sqrt(LN2 / (width_R ** 2))

    # Pad G (27) up to a multiple of 8 (32); padded coeffs columns are zero so
    # padded grid points contribute exactly 0.
    gp = _round_up(max(G, 8), 8)
    gcat = jnp.zeros((2 * gp, 3), jnp.float32)
    gcat = gcat.at[:G, :].set(grid_x.astype(jnp.float32) * ss_x)
    gcat = gcat.at[gp:gp + G, :].set(grid_R.astype(jnp.float32) * ss_R)

    # Block-diagonal transposed coeffs: [2C, 2*gp]
    acat = jnp.zeros((2 * C, 2 * gp), jnp.float32)
    acat = acat.at[:C, :G].set(coeffs_x.T.astype(jnp.float32))
    acat = acat.at[C:, gp:gp + G].set(coeffs_R.T.astype(jnp.float32))

    # Edges-on-lanes layout, padded to a multiple of the tile size.
    tile_e = min(tile_e, _round_up(E, 128))
    assert tile_e % 128 == 0
    e_pad = _round_up(E, tile_e)
    ct = jnp.zeros((6, e_pad), jnp.float32)
    ct = ct.at[:, :E].set(edge_attr_relpos_se3.T.astype(jnp.float32))

    kernel = partial(_rbf_se3_kernel, gp=gp, sqrt_scales=(ss_x, ss_R))

    out_t = pl.pallas_call(
        kernel,
        out_shape=jax.ShapeDtypeStruct((C, e_pad), out_dtype),
        grid_spec=pltpu.PrefetchScalarGridSpec(
            num_scalar_prefetch=0,
            grid=(e_pad // tile_e,),
            in_specs=[
                pl.BlockSpec((6, tile_e), lambda i: (0, i)),        # edge coords
                pl.BlockSpec((2 * gp, 3), lambda i: (0, 0)),        # grids (resident)
                pl.BlockSpec((2 * C, 2 * gp), lambda i: (0, 0)),    # coeffs (resident)
            ],
            out_specs=pl.BlockSpec((C, tile_e), lambda i: (0, i)),
        ),
        compiler_params=pltpu.CompilerParams(
            dimension_semantics=("parallel",)),
    )(ct, gcat, acat)

    # Kernel emits [C, E_pad] (lane-dense stores); consumers that accept [C, E]
    # can skip this transpose entirely.
    return out_t[:, :E].T.astype(out_dtype)


# ---------------------------------------------------------------------------
# Pure-JAX reference (mirrors the PyTorch forward exactly)
# ---------------------------------------------------------------------------
def rbf_se3_reference(x, params):
    def one(c, grid, width, coeffs):
        p = rbf_host(pairwise_dist(c, grid), width)
        return p @ coeffs
    gx, wx, ax = params["x"]
    gR, wR, aR = params["R"]
    return one(x[:, :3], gx, wx, ax) * one(x[:, 3:], gR, wR, aR)


if __name__ == "__main__":
    # Module hyperparameters (small, consistent with RBF_SE3.__init__)
    radius = 1.0
    n_x = 3          # -> 27 translation grid points
    n_R = 3          # -> 27 rotation grid points
    codomain_dim = 32
    E = 1000         # number of edges (deliberately NOT a multiple of the tile)

    key = jax.random.PRNGKey(0)
    k_wx, k_wR, k_in = jax.random.split(key, 3)

    params = {
        "x": make_rbf_euclidean_params(
            k_wx, [-radius] * 3, [radius] * 3, [n_x] * 3, codomain_dim),
        "R": make_rbf_euclidean_params(
            k_wR, [-math.pi] * 3, [math.pi] * 3, [n_R] * 3, codomain_dim),
    }

    # edge_attr_relpos_se3: [E, 6] = (dx, dy, dz, rx, ry, rz)
    edge_attr = jax.random.uniform(
        k_in, (E, 6), dtype=jnp.float32, minval=-1.0, maxval=1.0)

    out = rbf_se3_forward(edge_attr, params, tile_e=512)
    out = jax.block_until_ready(out)

    ref = rbf_se3_reference(edge_attr, params)
    assert out.shape == (E, codomain_dim)
    assert jnp.allclose(out, ref, atol=1e-4, rtol=1e-4), "mismatch vs reference"

    print("KERNEL_OK")
</pallas_src>

<mosaic_0001>
module attributes {stable_mosaic.version = 11 : i64} {
  func.func @_rbf_se3_kernel(%arg0: i32, %arg1: memref<6x512xf32, #tpu.memory_space<vmem>>, %arg2: memref<64x3xf32, #tpu.memory_space<vmem>>, %arg3: memref<64x64xf32, #tpu.memory_space<vmem>>, %arg4: memref<32x512xf32, #tpu.memory_space<vmem>>) attributes {dimension_semantics = [#tpu.dimension_semantics<parallel>], iteration_bounds = array<i64: 2>, scalar_prefetch = 0 : i64, scratch_operands = 0 : i64, tpu.core_type = #tpu.core_type<tc>, window_params = [{transform_indices = @transform_0, window_bounds = array<i64: 6, 512>}, {pipeline_mode = #tpu.pipeline_mode<synchronous>, transform_indices = @transform_1, window_bounds = array<i64: 64, 3>}, {pipeline_mode = #tpu.pipeline_mode<synchronous>, transform_indices = @transform_2, window_bounds = array<i64: 64, 64>}, {transform_indices = @transform_3, window_bounds = array<i64: 32, 512>}]} {
    %c0 = arith.constant 0 : index
    %c0_0 = arith.constant 0 : index
    %0 = vector.load %arg1[%c0, %c0_0] : memref<6x512xf32, #tpu.memory_space<vmem>>, vector<1x512xf32>
    %cst = arith.constant 0.832554638 : f32
    %1 = vector.broadcast %cst : f32 to vector<1x512xf32>
    %2 = arith.mulf %0, %1 : vector<1x512xf32>
    %c0_1 = arith.constant 0 : index
    %c0_2 = arith.constant 0 : index
    %3 = vector.load %arg2[%c0_1, %c0_2] : memref<64x3xf32, #tpu.memory_space<vmem>>, vector<32x1xf32>
    %4 = vector.broadcast %3 : vector<32x1xf32> to vector<32x512xf32>
    %5 = vector.broadcast %2 : vector<1x512xf32> to vector<32x512xf32>
    %6 = arith.subf %4, %5 : vector<32x512xf32>
    %7 = arith.mulf %6, %6 : vector<32x512xf32>
    %c1 = arith.constant 1 : index
    %c0_3 = arith.constant 0 : index
    %8 = vector.load %arg1[%c1, %c0_3] : memref<6x512xf32, #tpu.memory_space<vmem>>, vector<1x512xf32>
    %cst_4 = arith.constant 0.832554638 : f32
    %9 = vector.broadcast %cst_4 : f32 to vector<1x512xf32>
    %10 = arith.mulf %8, %9 : vector<1x512xf32>
    %c0_5 = arith.constant 0 : index
    %c1_6 = arith.constant 1 : index
    %11 = vector.load %arg2[%c0_5, %c1_6] : memref<64x3xf32, #tpu.memory_space<vmem>>, vector<32x1xf32>
    %12 = vector.broadcast %11 : vector<32x1xf32> to vector<32x512xf32>
    %13 = vector.broadcast %10 : vector<1x512xf32> to vector<32x512xf32>
    %14 = arith.subf %12, %13 : vector<32x512xf32>
    %15 = arith.mulf %14, %14 : vector<32x512xf32>
    %16 = arith.addf %7, %15 : vector<32x512xf32>
    %c2 = arith.constant 2 : index
    %c0_7 = arith.constant 0 : index
    %17 = vector.load %arg1[%c2, %c0_7] : memref<6x512xf32, #tpu.memory_space<vmem>>, vector<1x512xf32>
    %cst_8 = arith.constant 0.832554638 : f32
    %18 = vector.broadcast %cst_8 : f32 to vector<1x512xf32>
    %19 = arith.mulf %17, %18 : vector<1x512xf32>
    %c0_9 = arith.constant 0 : index
    %c2_10 = arith.constant 2 : index
    %20 = vector.load %arg2[%c0_9, %c2_10] : memref<64x3xf32, #tpu.memory_space<vmem>>, vector<32x1xf32>
    %21 = vector.broadcast %20 : vector<32x1xf32> to vector<32x512xf32>
    %22 = vector.broadcast %19 : vector<1x512xf32> to vector<32x512xf32>
    %23 = arith.subf %21, %22 : vector<32x512xf32>
    %24 = arith.mulf %23, %23 : vector<32x512xf32>
    %25 = arith.addf %16, %24 : vector<32x512xf32>
    %c3 = arith.constant 3 : index
    %c0_11 = arith.constant 0 : index
    %26 = vector.load %arg1[%c3, %c0_11] : memref<6x512xf32, #tpu.memory_space<vmem>>, vector<1x512xf32>
    %cst_12 = arith.constant 0.265010297 : f32
    %27 = vector.broadcast %cst_12 : f32 to vector<1x512xf32>
    %28 = arith.mulf %26, %27 : vector<1x512xf32>
    %c32 = arith.constant 32 : index
    %c0_13 = arith.constant 0 : index
    %29 = vector.load %arg2[%c32, %c0_13] : memref<64x3xf32, #tpu.memory_space<vmem>>, vector<32x1xf32>
    %30 = vector.broadcast %29 : vector<32x1xf32> to vector<32x512xf32>
    %31 = vector.broadcast %28 : vector<1x512xf32> to vector<32x512xf32>
    %32 = arith.subf %30, %31 : vector<32x512xf32>
    %33 = arith.mulf %32, %32 : vector<32x512xf32>
    %c4 = arith.constant 4 : index
    %c0_14 = arith.constant 0 : index
    %34 = vector.load %arg1[%c4, %c0_14] : memref<6x512xf32, #tpu.memory_space<vmem>>, vector<1x512xf32>
    %cst_15 = arith.constant 0.265010297 : f32
    %35 = vector.broadcast %cst_15 : f32 to vector<1x512xf32>
    %36 = arith.mulf %34, %35 : vector<1x512xf32>
    %c32_16 = arith.constant 32 : index
    %c1_17 = arith.constant 1 : index
    %37 = vector.load %arg2[%c32_16, %c1_17] : memref<64x3xf32, #tpu.memory_space<vmem>>, vector<32x1xf32>
    %38 = vector.broadcast %37 : vector<32x1xf32> to vector<32x512xf32>
    %39 = vector.broadcast %36 : vector<1x512xf32> to vector<32x512xf32>
    %40 = arith.subf %38, %39 : vector<32x512xf32>
    %41 = arith.mulf %40, %40 : vector<32x512xf32>
    %42 = arith.addf %33, %41 : vector<32x512xf32>
    %c5 = arith.constant 5 : index
    %c0_18 = arith.constant 0 : index
    %43 = vector.load %arg1[%c5, %c0_18] : memref<6x512xf32, #tpu.memory_space<vmem>>, vector<1x512xf32>
    %cst_19 = arith.constant 0.265010297 : f32
    %44 = vector.broadcast %cst_19 : f32 to vector<1x512xf32>
    %45 = arith.mulf %43, %44 : vector<1x512xf32>
    %c32_20 = arith.constant 32 : index
    %c2_21 = arith.constant 2 : index
    %46 = vector.load %arg2[%c32_20, %c2_21] : memref<64x3xf32, #tpu.memory_space<vmem>>, vector<32x1xf32>
    %47 = vector.broadcast %46 : vector<32x1xf32> to vector<32x512xf32>
    %48 = vector.broadcast %45 : vector<1x512xf32> to vector<32x512xf32>
    %49 = arith.subf %47, %48 : vector<32x512xf32>
    %50 = arith.mulf %49, %49 : vector<32x512xf32>
    %51 = arith.addf %42, %50 : vector<32x512xf32>
    %52 = tpu.concatenate %25, %51 in 0 : vector<32x512xf32>, vector<32x512xf32> -> vector<64x512xf32>
    %cst_22 = arith.constant 0.000000e+00 : f32
    %53 = vector.broadcast %cst_22 : f32 to vector<64x512xf32>
    %54 = arith.subf %53, %52 : vector<64x512xf32>
    %55 = math.exp %54 : vector<64x512xf32>
    %c0_23 = arith.constant 0 : index
    %c0_24 = arith.constant 0 : index
    %56 = vector.load %arg3[%c0_23, %c0_24] : memref<64x64xf32, #tpu.memory_space<vmem>>, vector<64x64xf32>
    %cst_25 = arith.constant dense<0.000000e+00> : vector<64x512xf32>
    %57 = tpu.matmul %56, %55, %cst_25 {dimension_numbers = #tpu.dot_dimension_numbers<[1], [0], [0], [1], [0, 0, 1, 1], [], []>} : vector<64x64xf32>, vector<64x512xf32>, vector<64x512xf32> -> vector<64x512xf32>
    %58 = vector.extract_strided_slice %57 {offsets = [0, 0], sizes = [32, 512], strides = [1, 1]} : vector<64x512xf32> to vector<32x512xf32>
    %59 = vector.extract_strided_slice %57 {offsets = [32, 0], sizes = [32, 512], strides = [1, 1]} : vector<64x512xf32> to vector<32x512xf32>
    %60 = arith.mulf %58, %59 : vector<32x512xf32>
    %c0_26 = arith.constant 0 : index
    %c0_27 = arith.constant 0 : index
    %61 = vector.load %arg4[%c0_26, %c0_27] : memref<32x512xf32, #tpu.memory_space<vmem>>, vector<32x512xf32>
    tpu.vector_store %arg4[%c0_26, %c0_27], %60 {strides = array<i32>} : memref<32x512xf32, #tpu.memory_space<vmem>>, vector<32x512xf32>,
    return
  }
  func.func @transform_0(%arg0: i32) -> (i32, i32) {
    %c0_i32 = arith.constant 0 : i32
    %c0_i32_0 = arith.constant 0 : i32
    return %c0_i32, %arg0 : i32, i32
  }
  func.func @transform_1(%arg0: i32) -> (i32, i32) {
    %c0_i32 = arith.constant 0 : i32
    %c0_i32_0 = arith.constant 0 : i32
    %c0_i32_1 = arith.constant 0 : i32
    return %c0_i32, %c0_i32_0 : i32, i32
  }
  func.func @transform_2(%arg0: i32) -> (i32, i32) {
    %c0_i32 = arith.constant 0 : i32
    %c0_i32_0 = arith.constant 0 : i32
    %c0_i32_1 = arith.constant 0 : i32
    return %c0_i32, %c0_i32_0 : i32, i32
  }
  func.func @transform_3(%arg0: i32) -> (i32, i32) {
    %c0_i32 = arith.constant 0 : i32
    %c0_i32_0 = arith.constant 0 : i32
    return %c0_i32, %arg0 : i32, i32
  }
}

</mosaic_0001>

<bundles_post_ra>
// kernel: tpu_custom_call.1
= control target key start
LH: loop header
LB: loop body
LE: loop exit
PB: predicated region body
PF: predicated region fallthrough
CT: control target
= control target key end

     0   :  { %8 = vsyncpa [#allocation3], 0  ;;  %s1904_s0 = inlined_call_operand.vmem [shape: f32[6,1024], index: 0, kind: input, shape index: {}]   ;;  %s1905_s1 = inlined_call_operand.vmem [shape: f32[64,3], index: 1, kind: input, shape index: {}]   ;;  %s1906_s2 = inlined_call_operand.hbm [shape: f32[64,64], index: 2, kind: input, shape index: {}]   ;;  %s1907_s3 = inlined_call_operand.hbm [shape: f32[32,1024], index: 3, kind: output, shape index: {}]  }
   0x1   :  { %9 = vsyncpa [#allocation4], 0 }
   0x2   :  { %11 = vsyncpa [#allocation4 + $0x1], 0  ;;  %s1358_s12 = smov 0   ;;  %s1360_s13 = smov 0  }
   0x3   :  { %s1362_s14 = smov 0   ;;  %s1364_s15 = smov 0  }
   0x4 LB: > { %s1379_s16 = sadd.s32 4294967295, %s1327_s15   ;;  %s1043_s17 = sadd.s32 4294967294, %s1327_s15   ;;  %s1327_s15 = sphi %s1364_s15, %s1921_s15   ;;  %s1323_s14 = sphi %s1362_s14, %s1920_s14   ;;  %s1319_s13 = sphi %s1360_s13, %s1919_s13   ;;  %s1315_s12 = sphi %s1358_s12, %s1918_s12  }
   0x5   : > { %s1383_s18 = sadd.s32 1, %s1327_s15   ;;  %s92_s19 = sadd.s32 1, %s1323_s14 }
   0x6   : > { %s89_s20 = ssub.s32 %s1327_s15, %s1383_s18  ;;  %p102_p0 = scmp.ne.s32.totalorder %s1323_s14, %s1319_s13 }
   0x7   : > { %p90_p1 = scmp.eq.s32.totalorder %s89_s20, 0  ;;  %p103_p2 = scmp.eq.s32.totalorder %s1379_s16, 1 }
   0x8   : > { %p108_p3 = scmp.ne.s32.totalorder %s1319_s13, %s1315_s12  ;;  %p109_p4 = scmp.eq.s32.totalorder %s1043_s17, 1 }
   0x9   : > { %s1394_s21 = scalar_select %p90_p1, %s1323_s14, %s92_s19  }
   0xa   : > { %p1396_p5 = por %p103_p2, %p102_p0  ;;  %p1400_p6 = por %p109_p4, %p108_p3 }
   0xb   : > { %p1044_p7 = scmp.ge.s32.totalorder %s1327_s15, 1  ;;  %p116_p8 = scmp.lt.s32.totalorder %s1327_s15, 3 }
   0xc   : > { %p1109_p9 = scmp.eq.s32.totalorder %s1379_s16, 0  ;;  %s130_s26 = sshll.u32 %s1906_s2, 4  ;;  %s131_s26 = int_to_ptr.hbm [resolvable:$true] %s130_s26 }
   0xd   : > { %p117_p10 = pnand %p1044_p7, %p116_p8  ;;  %s1329_s27 = smov [#allocation2]  }
   0xe   : > { %s132_s28 = sshll.u32 %s1329_s27, 4  ;;  %s1330_s29 = smov 128   ;;  %s133_s28 = int_to_ptr.vmem [resolvable:$true] %s132_s28 }
   0xf   : > { %p1101_p11 = pneg %p117_p10  ;;  %s1331_s30 = smov 8  }
  0x10   : > { %157 = sbr.rel (%p117_p10) target bundleno = 433 (0x1b1), region = 32 }
  0x11   : > { %p1102_p12 = pnand %p1109_p9, %p1101_p11 }
  0x13   : > { %1104 = dma.hbm_to_vmem [thread:$0]  (!%p1102_p12), %s131_s26, 1024, %s133_s28, [#allocation3], %s1330_s29, %s1330_s29, %s1331_s30  }
  0x15   : > { %1306 = dma.done.wait (%p1109_p9), [#allocation3], 1024  }
  0x16   : > { %1308 = vsyncadd (%p1109_p9), [#allocation3], 4294966272  ;;  %v1332_v0 = vmov 0   ;;  %v1333_v1 = vmov 2   ;;  %v414_v2 = vld [vmem:[%s1905_s1 + $0x38] sm:$0xff]  ;;  %v413_v3 = vld [vmem:[%s1905_s1 + $0x30] sm:$0xff] }
  0x17   : > { %1154 = vset.pattern.permute.xlu1 %v1332_v0  ;;  %1153 = vset.pattern.permute.xlu0 %v1332_v0  ;;  %v411_v4 = vld [vmem:[%s1905_s1 + $0x20] sm:$0xff]  ;;  %v412_v5 = vld [vmem:[%s1905_s1 + $0x28] sm:$0xff]  ;;  %v1334_v6 = vmov 1   ;;  %v194_v8 = vld [vmem:[%s1905_s1 + $0x18] sm:$0xff]  ;;  %s1050_s29 = sshll.u32 %s1379_s16, 2  ;;  %vm732_vm0 = vcmask 523264  }
  0x18   : > { %1156 = vset.pattern.permute.xlu2 %v1333_v1  ;;  %432 = vperm.xlu0 %1153, %v414_v2   ;;  %v192_v7 = vld [vmem:[%s1905_s1 + $0x8] sm:$0xff]  ;;  %v193_v9 = vld [vmem:[%s1905_s1 + $0x10] sm:$0xff]  ;;  %v191_v10 = vld [vmem:[%s1905_s1] sm:$0xff]  ;;  %p183_p13 = scmp.lt.s32.totalorder %s1050_s29, 7  ;;  %s179_s7 = sand.u32 1, %s1319_s13  }
  0x19   : > { %427 = vperm.xlu1 %1154, %v413_v3   ;;  %568 = vperm.xlu2 %1156, %v414_v2   ;;  %s1049_s8 = sshll.u32 %s179_s7, 7  ;;  %s1094_s10 = sshll.u32 %s1379_s16, 5 }
  0x1a   : > { %s1923_s29 = smov (!%p183_p13, %s1050_s29), 7  ;;  %s1852_s9 = scalar_lea.vmem [#allocation5], %s1049_s8 }
  0x1b   : > { %s1051_s30 = sshll.u32 %s1923_s29, 3  ;;  %s965_s19 = scalar_lea.hbm %s1907_s3, %s1094_s10 }
  0x1c   : > { %s1444_s6 = scalar_lea.vmem %s1904_s0, %s1051_s30  ;;  %s966_s20 = sshll.u32 %s1852_s9, 4  ;;  %s967_s20 = int_to_ptr.vmem [resolvable:$true] %s966_s20 }
  0x1d   : > { %v1056_v12 = vld [vmem:[%s1444_s6 + $0x5] ss:$8 sm:$0xf]  ;;  %v1054_v14 = vld [vmem:[%s1444_s6 + $0x3] ss:$8 sm:$0xf] }
  0x1e   : > { %v554_v15 = vmul.f32 0.2650103, %v1056_v12  ;;  %v410_v16 = vmul.f32 0.2650103, %v1054_v14  ;;  %s968_s16 = sshll.u32 %s965_s19, 4  ;;  %s954_s24 = scalar_lea.sflag [#allocation4], %s179_s7  ;;  %s969_s16 = int_to_ptr.hbm [resolvable:$true] %s968_s16 }
  0x1f   : > { %v1055_v17 = vld [vmem:[%s1444_s6 + $0x4] ss:$8 sm:$0xf]  ;;  %v1052_v23 = vld [vmem:[%s1444_s6 + $0x1] ss:$8 sm:$0xf] }
  0x20   : > { %417 = vperm.xlu0 %1153, %v411_v4   ;;  %v1449_v18 = vperm.slane %v554_v15, 0  ;;  %v1451_v19 = vperm.slane %v554_v15, 1  ;;  %v1453_v20 = vperm.slane %v554_v15, 2  ;;  %v1455_v21 = vperm.slane %v554_v15, 3  ;;  %s1275_s25 = sshra.s32 %s969_s16, 4  ;;  %s1281_s29 = scalar_lea.hbm %s1907_s3, 256  ;;  %s1276_s25 = int_to_ptr.hbm [resolvable:$true] %s1275_s25 }
  0x21   : > { %1155 = vset.pattern.permute.xlu1 %v1334_v6  ;;  %1157 = vset.pattern.permute.xlu2 %v1332_v0  ;;  %v478_v22 = vmul.f32 0.2650103, %v1055_v17  ;;  %v1458_v24 = vperm.slane %v410_v16, 0  ;;  %v1464_v29 = vperm.slane %v410_v16, 1  ;;  %v258_v31 = vmul.f32 0.83255464, %v1052_v23  ;;  %p1282_p3 = scmp.lt.s32.totalorder %s1276_s25, %s1907_s3 }
  0x22   : > { %488 = vperm.xlu1 %1155, %v413_v3   ;;  %422 = vperm.xlu2 %1157, %v412_v5   ;;  %v1466_v32 = vperm.slane %v410_v16, 2  ;;  %v1468_v33 = vperm.slane %v410_v16, 3  ;;  %v189_v58 = vld [vmem:[%s1444_s6] ss:$8 sm:$0xf]  ;;  %s1277_s26 = scalar_lea.hbm %s1276_s25, 128 }
  0x23   : > { %v1471_v35 = vperm.slane %v478_v22, 0  ;;  %v1474_v37 = vperm.slane %v478_v22, 1  ;;  %v1476_v38 = vperm.slane %v478_v22, 2  ;;  %v1478_v39 = vperm.slane %v478_v22, 3  ;;  %p1278_p0 = scmp.ne.s32.totalorder %s1276_s25, %s1277_s26  ;;  %p1283_p4 = scmp.lt.s32.totalorder %s1281_s29, %s1277_s26 }
  0x24   : > { %v1488_v44 = vperm.slane %v258_v31, 0  ;;  %v1490_v45 = vperm.slane %v258_v31, 1  ;;  %v1492_v46 = vperm.slane %v258_v31, 2  ;;  %v1494_v47 = vperm.slane %v258_v31, 3 }
  0x25   : > { %p1279_p1 = pnand %p1278_p0, %p1396_p5  ;;  %p1284_p7 = por %p1283_p4, %p1282_p3 }
  0x27   : > { %p1280_p2 = pneg %p1279_p1 }
  0x28   : > { %1159 = vset.pattern.permute.xlu0 %v1334_v6 }
  0x29   : > { %492 = vperm.xlu0 %1159, %v414_v2   ;;  %p1285_p8 = pnand %p1284_p7, %p1280_p2 }
  0x2a   : > { %484 = vperm.xlu1 %1155, %v412_v5   ;;  %1158 = vset.pattern.permute.xlu2 %v1333_v1 }
  0x2b   : > { %564 = vperm.xlu2 %1158, %v413_v3  }
  0x31   : > { %264 = vperm.xlu0 %1159, %v192_v7  }
  0x32   : > { %480 = vperm.xlu1 %1155, %v411_v4  }
  0x33   : > { %560 = vperm.xlu2 %1158, %v412_v5  }
  0x39   : > { %1164 = vset.pattern.permute.xlu0 %v1333_v1 }
  0x3a   : > { %1160 = vset.pattern.permute.xlu1 %v1332_v0  ;;  %556 = vperm.xlu0 %1164, %v411_v4  }
  0x3b   : > { %212 = vperm.xlu1 %1160, %v194_v8   ;;  %1161 = vset.pattern.permute.xlu2 %v1334_v6 }
  0x3c   : > { %272 = vperm.xlu2 %1161, %v194_v8  }
  0x42   : > { %336 = vperm.xlu0 %1164, %v191_v10  }
  0x43   : > { %207 = vperm.xlu1 %1160, %v193_v9  }
  0x44   : > { %268 = vperm.xlu2 %1161, %v193_v9  }
  0x4b   : > { %1162 = vset.pattern.permute.xlu1 %v1333_v1 }
  0x4c   : > { %348 = vperm.xlu1 %1162, %v194_v8   ;;  %1163 = vset.pattern.permute.xlu2 %v1332_v0 }
  0x4d   : > { %202 = vperm.xlu2 %1163, %v192_v7  }
  0x54   : > { %344 = vperm.xlu1 %1162, %v193_v9  }
  0x55   : > { %197 = vperm.xlu2 %1163, %v191_v10  }
  0x5c   : > { %1165 = vset.pattern.permute.xlu1 %v1334_v6 }
  0x5d   : > { %260 = vperm.xlu1 %1165, %v191_v10   ;;  %1166 = vset.pattern.permute.xlu2 %v1333_v1 }
  0x5e   : > { %340 = vperm.xlu2 %1166, %v192_v7   ;;  %v190_v7 = vmul.f32 0.83255464, %v189_v58 }
  0x73   : > { %v569_v11 = vpop.permute.xlu2 %568 }
  0x74   : > { %v592_v25 = vsub.f32 %v569_v11, %v1449_v18  ;;  %v593_v26 = vsub.f32 %v569_v11, %v1451_v19  ;;  %v594_v27 = vsub.f32 %v569_v11, %v1453_v20  ;;  %v595_v28 = vsub.f32 %v569_v11, %v1455_v21 }
  0x76   : > { %v1480_v40 = vmul.f32 %v592_v25, %v592_v25  ;;  %v1482_v41 = vmul.f32 %v593_v26, %v593_v26  ;;  %v1484_v42 = vmul.f32 %v594_v27, %v594_v27  ;;  %v1486_v43 = vmul.f32 %v595_v28, %v595_v28 }
  0x7c   : > { %v423_v13 = vpop.permute.xlu2 %422 }
  0x7d   : > { %v448_v34 = vsub.f32 %v423_v13, %v1458_v24  ;;  %v449_v36 = vsub.f32 %v423_v13, %v1464_v29  ;;  %v450_v48 = vsub.f32 %v423_v13, %v1466_v32  ;;  %v451_v49 = vsub.f32 %v423_v13, %v1468_v33 }
  0x7f   : > { %v1498_v50 = vmul.f32 %v448_v34, %v448_v34  ;;  %v1501_v54 = vmul.f32 %v449_v36, %v449_v36  ;;  %v1515_v4 = vmul.f32 %v450_v48, %v450_v48  ;;  %v1517_v5 = vmul.f32 %v451_v49, %v451_v49 }
  0x80   : > { %v1541_v36 = vperm.slane %v190_v7, 1  ;;  %v1543_v48 = vperm.slane %v190_v7, 2  ;;  %v1545_v49 = vperm.slane %v190_v7, 3 }
  0x85   : > { %v565_v30 = vpop.permute.xlu2 %564 }
  0x86   : > { %v588_v51 = vsub.f32 %v565_v30, %v1449_v18  ;;  %v589_v55 = vsub.f32 %v565_v30, %v1451_v19  ;;  %v590_v56 = vsub.f32 %v565_v30, %v1453_v20  ;;  %v591_v57 = vsub.f32 %v565_v30, %v1455_v21 }
  0x87   : > { %v1537_v30 = vperm.slane %v190_v7, 0 }
  0x88   : > { %v604_v6 = vmul.f32 %v588_v51, %v588_v51  ;;  %v1519_v8 = vmul.f32 %v589_v55, %v589_v55  ;;  %v1521_v9 = vmul.f32 %v590_v56, %v590_v56  ;;  %v1523_v10 = vmul.f32 %v591_v57, %v591_v57 }
  0x8a   : > { %v433_v53 = vpop.permute.xlu0 %432 }
  0x8b   : > { %v428_v52 = vpop.permute.xlu1 %427  ;;  %v456_v63 = vsub.f32 %v433_v53, %v1458_v24  ;;  %v457_v0 = vsub.f32 %v433_v53, %v1464_v29  ;;  %v458_v1 = vsub.f32 %v433_v53, %v1466_v32  ;;  %v459_v2 = vsub.f32 %v433_v53, %v1468_v33 }
  0x8c   : > { %v452_v59 = vsub.f32 %v428_v52, %v1458_v24  ;;  %v453_v60 = vsub.f32 %v428_v52, %v1464_v29  ;;  %v454_v61 = vsub.f32 %v428_v52, %v1466_v32  ;;  %v455_v62 = vsub.f32 %v428_v52, %v1468_v33 }
  0x8d   : > { %v561_v3 = vpop.permute.xlu2 %560  ;;  %v1526_v16 = vmul.f32 %v456_v63, %v456_v63  ;;  %v1528_v17 = vmul.f32 %v457_v0, %v457_v0  ;;  %v1530_v22 = vmul.f32 %v458_v1, %v458_v1  ;;  %v1532_v23 = vmul.f32 %v459_v2, %v459_v2 }
  0x8e   : > { %v584_v11 = vsub.f32 %v561_v3, %v1449_v18  ;;  %v468_v12 = vmul.f32 %v452_v59, %v452_v59  ;;  %v469_v13 = vmul.f32 %v453_v60, %v453_v60  ;;  %v470_v14 = vmul.f32 %v454_v61, %v454_v61 }
  0x8f   : > { %v471_v15 = vmul.f32 %v455_v62, %v455_v62  ;;  %v585_v25 = vsub.f32 %v561_v3, %v1451_v19  ;;  %v586_v26 = vsub.f32 %v561_v3, %v1453_v20  ;;  %v587_v27 = vsub.f32 %v561_v3, %v1455_v21 }
  0x90   : > { %v1539_v31 = vmul.f32 %v584_v11, %v584_v11 }
  0x92   : > { %v418_v28 = vpop.permute.xlu0 %417  ;;  %1910 = vst [vmem:[#allocation8_spill] sm:$0xff] %v1539_v31 }
  0x93   : > { %v444_v56 = vsub.f32 %v418_v28, %v1458_v24  ;;  %v445_v57 = vsub.f32 %v418_v28, %v1464_v29  ;;  %v446_v58 = vsub.f32 %v418_v28, %v1466_v32  ;;  %v447_v59 = vsub.f32 %v418_v28, %v1468_v33 }
  0x94   : > { %v489_v34 = vpop.permute.xlu1 %488  ;;  %v1559_v24 = vmul.f32 %v585_v25, %v585_v25  ;;  %v1561_v29 = vmul.f32 %v586_v26, %v586_v26  ;;  %v1563_v32 = vmul.f32 %v587_v27, %v587_v27 }
  0x95   : > { %v512_v51 = vsub.f32 %v489_v34, %v1471_v35  ;;  %v513_v52 = vsub.f32 %v489_v34, %v1474_v37  ;;  %v514_v53 = vsub.f32 %v489_v34, %v1476_v38  ;;  %v515_v55 = vsub.f32 %v489_v34, %v1478_v39 }
  0x96   : > { %v273_v0 = vpop.permute.xlu2 %272  ;;  %1911 = vst [vmem:[#allocation9_spill] sm:$0xff] %v1559_v24  ;;  %v1565_v11 = vmul.f32 %v444_v56, %v444_v56  ;;  %v1567_v28 = vmul.f32 %v445_v57, %v445_v57  ;;  %v1569_v34 = vmul.f32 %v446_v58, %v446_v58 }
  0x97   : > { %v528_v60 = vmul.f32 %v512_v51, %v512_v51  ;;  %v529_v61 = vmul.f32 %v513_v52, %v513_v52  ;;  %v530_v62 = vmul.f32 %v514_v53, %v514_v53  ;;  %v531_v63 = vmul.f32 %v515_v55, %v515_v55  ;;  %1912 = vst [vmem:[#allocation10_spill] sm:$0xff] %v1561_v29 }
  0x98   : > { %v296_v1 = vsub.f32 %v273_v0, %v1488_v44  ;;  %v297_v2 = vsub.f32 %v273_v0, %v1490_v45  ;;  %v298_v3 = vsub.f32 %v273_v0, %v1492_v46  ;;  %v299_v7 = vsub.f32 %v273_v0, %v1494_v47  ;;  %1913 = vst [vmem:[#allocation11_spill] sm:$0xff] %v1563_v32 }
  0x99   : > { %v544_v33 = vadd.f32 %v528_v60, %v468_v12  ;;  %v1571_v51 = vmul.f32 %v447_v59, %v447_v59  ;;  %v545_v52 = vadd.f32 %v529_v61, %v469_v13  ;;  %v546_v53 = vadd.f32 %v530_v62, %v470_v14 }
  0x9a   : > { %v547_v55 = vadd.f32 %v531_v63, %v471_v15  ;;  %v1573_v31 = vmul.f32 %v296_v1, %v296_v1  ;;  %v1575_v25 = vmul.f32 %v297_v2, %v297_v2  ;;  %v1577_v26 = vmul.f32 %v298_v3, %v298_v3 }
  0x9b   : > { %v1579_v27 = vmul.f32 %v299_v7, %v299_v7  ;;  %v493_v56 = vpop.permute.xlu0 %492  ;;  %v1581_v60 = vadd.f32 %v604_v6, %v544_v33  ;;  %v1598_v24 = vadd.f32 %v1521_v9, %v546_v53 }
  0x9c   : > { %v485_v12 = vpop.permute.xlu1 %484  ;;  %v516_v15 = vsub.f32 %v493_v56, %v1471_v35  ;;  %v517_v59 = vsub.f32 %v493_v56, %v1474_v37  ;;  %v518_v61 = vsub.f32 %v493_v56, %v1476_v38  ;;  %v519_v62 = vsub.f32 %v493_v56, %v1478_v39 }
  0x9d   : > { %v508_v57 = vsub.f32 %v485_v12, %v1471_v35  ;;  %v509_v58 = vsub.f32 %v485_v12, %v1474_v37  ;;  %v510_v13 = vsub.f32 %v485_v12, %v1476_v38  ;;  %v511_v14 = vsub.f32 %v485_v12, %v1478_v39 }
  0x9e   : > { %v269_v2 = vpop.permute.xlu2 %268  ;;  %v532_v3 = vmul.f32 %v516_v15, %v516_v15  ;;  %v533_v7 = vmul.f32 %v517_v59, %v517_v59  ;;  %v534_v33 = vmul.f32 %v518_v61, %v518_v61  ;;  %v535_v32 = vmul.f32 %v519_v62, %v519_v62 }
  0x9f   : > { %v524_v63 = vmul.f32 %v508_v57, %v508_v57  ;;  %v525_v0 = vmul.f32 %v509_v58, %v509_v58  ;;  %v526_v6 = vmul.f32 %v510_v13, %v510_v13  ;;  %v527_v1 = vmul.f32 %v511_v14, %v511_v14 }
  0xa0   : > { %v1595_v12 = vadd.f32 %v1519_v8, %v545_v52  ;;  %v1601_v56 = vadd.f32 %v1523_v10, %v547_v55  ;;  %v293_v8 = vsub.f32 %v269_v2, %v1490_v45  ;;  %v294_v52 = vsub.f32 %v269_v2, %v1492_v46 }
  0xa1   : > { %v1592_v29 = vadd.f32 %v524_v63, %v1498_v50  ;;  %v1604_v57 = vadd.f32 %v525_v0, %v1501_v54  ;;  %v1607_v58 = vadd.f32 %v526_v6, %v1515_v4  ;;  %v1610_v13 = vadd.f32 %v527_v1, %v1517_v5 }
  0xa2   : > { %v292_v50 = vsub.f32 %v269_v2, %v1488_v44  ;;  %v295_v9 = vsub.f32 %v269_v2, %v1494_v47  ;;  %v548_v10 = vadd.f32 %v532_v3, %v1526_v16  ;;  %v549_v4 = vadd.f32 %v533_v7, %v1528_v17 }
  0xa3   : > { %v265_v55 = vpop.permute.xlu0 %264  ;;  %v550_v14 = vadd.f32 %v534_v33, %v1530_v22  ;;  %v551_v5 = vadd.f32 %v535_v32, %v1532_v23  ;;  %v1630_v32 = vmul.f32 %v293_v8, %v293_v8 }
  0xa4   : > { %v1617_v53 = vmul.f32 %v292_v50, %v292_v50  ;;  %v481_v54 = vpop.permute.xlu1 %480  ;;  %v288_v16 = vsub.f32 %v265_v55, %v1488_v44  ;;  %v289_v63 = vsub.f32 %v265_v55, %v1490_v45  ;;  %v290_v0 = vsub.f32 %v265_v55, %v1492_v46 }
  0xa5   : > { %v504_v15 = vsub.f32 %v481_v54, %v1471_v35  ;;  %v505_v59 = vsub.f32 %v481_v54, %v1474_v37  ;;  %v506_v61 = vsub.f32 %v481_v54, %v1476_v38  ;;  %v507_v62 = vsub.f32 %v481_v54, %v1478_v39 }
  0xa6   : > { %v291_v17 = vsub.f32 %v265_v55, %v1494_v47  ;;  %v1632_v35 = vmul.f32 %v294_v52, %v294_v52  ;;  %v1634_v37 = vmul.f32 %v295_v9, %v295_v9  ;;  %v1636_v38 = vmul.f32 %v288_v16, %v288_v16 }
  0xa7   : > { %v520_v6 = vmul.f32 %v504_v15, %v504_v15  ;;  %v521_v22 = vmul.f32 %v505_v59, %v505_v59  ;;  %v522_v1 = vmul.f32 %v506_v61, %v506_v61  ;;  %v523_v23 = vmul.f32 %v507_v62, %v507_v62  ;;  %v203_v33 = vpop.permute.xlu2 %202 }
  0xa8   : > { %v1641_v2 = vmul.f32 %v289_v63, %v289_v63  ;;  %v1643_v3 = vmul.f32 %v290_v0, %v290_v0  ;;  %v1645_v7 = vmul.f32 %v291_v17, %v291_v17  ;;  %v228_v52 = vsub.f32 %v203_v33, %v1537_v30 }
  0xa9   : > { %v1639_v39 = vadd.f32 %v520_v6, %v1565_v11  ;;  %v1648_v50 = vadd.f32 %v521_v22, %v1567_v28  ;;  %v1651_v8 = vadd.f32 %v522_v1, %v1569_v34  ;;  %v229_v9 = vsub.f32 %v203_v33, %v1541_v36 }
  0xaa   : > { %v1656_v11 = vadd.f32 %v523_v23, %v1571_v51  ;;  %v624_v54 = vadd.f32 %v1480_v40, %v548_v10  ;;  %v625_v55 = vadd.f32 %v1482_v41, %v549_v4  ;;  %v626_v15 = vadd.f32 %v1484_v42, %v550_v14 }
  0xab   : > { %v230_v59 = vsub.f32 %v203_v33, %v1543_v48  ;;  %v231_v28 = vsub.f32 %v203_v33, %v1545_v49  ;;  %v1663_v61 = vmul.f32 %v228_v52, %v228_v52  ;;  %v627_v34 = vadd.f32 %v1486_v43, %v551_v5 }
  0xac   : > { %v1666_v62 = vmul.f32 %v229_v9, %v229_v9  ;;  %v557_v63 = vpop.permute.xlu0 %556  ;;  %v656_v51 = vsub.f32 0.0, %v624_v54  ;;  %v657_v0 = vsub.f32 0.0, %v625_v55  ;;  %v658_v17 = vsub.f32 0.0, %v626_v15 }
  0xad   : > { %v213_v16 = vpop.permute.xlu1 %212  ;;  %v580_v4 = vsub.f32 %v557_v63, %v1449_v18  ;;  %v581_v14 = vsub.f32 %v557_v63, %v1451_v19  ;;  %v582_v43 = vsub.f32 %v557_v63, %v1453_v20  ;;  %v583_v5 = vsub.f32 %v557_v63, %v1455_v21 }
  0xae   : > { %v236_v40 = vsub.f32 %v213_v16, %v1537_v30  ;;  %v237_v41 = vsub.f32 %v213_v16, %v1541_v36  ;;  %v238_v42 = vsub.f32 %v213_v16, %v1543_v48  ;;  %v239_v10 = vsub.f32 %v213_v16, %v1545_v49 }
  0xaf   : > { %v1676_v6 = vmul.f32 %v230_v59, %v230_v59  ;;  %v659_v23 = vsub.f32 0.0, %v627_v34  ;;  %v1678_v33 = vmul.f32 %v231_v28, %v231_v28  ;;  %v1680_v54 = vmul.f32 %v580_v4, %v580_v4 }
  0xb0   : > { %v252_v22 = vmul.f32 %v236_v40, %v236_v40  ;;  %v253_v1 = vmul.f32 %v237_v41, %v237_v41  ;;  %v254_v52 = vmul.f32 %v238_v42, %v238_v42  ;;  %v255_v9 = vmul.f32 %v239_v10, %v239_v10  ;;  %v198_v40 = vpop.permute.xlu2 %197 }
  0xb1   : > { %v1685_v18 = vmul.f32 %v581_v14, %v581_v14  ;;  %v1687_v19 = vmul.f32 %v582_v43, %v582_v43  ;;  %v1689_v20 = vmul.f32 %v583_v5, %v583_v5  ;;  %v716_v15 = vmul.f32 1.442695, %v656_v51 }
  0xb2   : > { %v1683_v55 = vadd.f32 %v1573_v31, %v252_v22  ;;  %v1692_v21 = vadd.f32 %v1575_v25, %v253_v1  ;;  %v718_v59 = vmul.f32 1.442695, %v657_v0  ;;  %v720_v28 = vmul.f32 1.442695, %v658_v17  ;;  %v1916_v22 = vld [vmem:[#allocation10_spill] sm:$0xff] }
  0xb3   : > { %v722_v34 = vmul.f32 1.442695, %v659_v23  ;;  %v652_v16 = vsub.f32 0.0, %v1581_v60  ;;  %v653_v63 = vsub.f32 0.0, %v1595_v12  ;;  %v654_v31 = vsub.f32 0.0, %v1598_v24 }
  0xb4   : > { %v1698_v41 = vadd.f32 %v1577_v26, %v254_v52  ;;  %1167 = vpow2.f32 %v716_v15  ;;  %v655_v42 = vsub.f32 0.0, %v1601_v56  ;;  %v224_v25 = vsub.f32 %v198_v40, %v1537_v30  ;;  %v1914_v56 = vld [vmem:[#allocation8_spill] sm:$0xff]  ;;  %v1917_v52 = vld [vmem:[#allocation11_spill] sm:$0xff] }
  0xb5   : > { %v208_v10 = vpop.permute.xlu1 %207  ;;  %v1703_v51 = vadd.f32 %v1579_v27, %v255_v9  ;;  %1169 = vpow2.f32 %v718_v59  ;;  %v708_v0 = vmul.f32 1.442695, %v652_v16  ;;  %v710_v60 = vmul.f32 1.442695, %v653_v63  ;;  %v1915_v27 = vld [vmem:[#allocation9_spill] sm:$0xff] }
  0xb6   : > { %1171 = vpow2.f32 %v720_v28  ;;  %v712_v12 = vmul.f32 1.442695, %v654_v31  ;;  %v225_v24 = vsub.f32 %v198_v40, %v1541_v36  ;;  %v226_v17 = vsub.f32 %v198_v40, %v1543_v48  ;;  %v1053_v31 = vld [vmem:[%s1444_s6 + $0x2] ss:$8 sm:$0xf] }
  0xb7   : > { %1173 = vpow2.f32 %v722_v34  ;;  %v714_v26 = vmul.f32 1.442695, %v655_v42  ;;  %v227_v4 = vsub.f32 %v198_v40, %v1545_v49  ;;  %v616_v14 = vadd.f32 %v1914_v56, %v1592_v29 }
  0xb8   : > { %1175 = vpow2.f32 %v708_v0  ;;  %v1710_v43 = vmul.f32 %v224_v25, %v224_v25  ;;  %v617_v5 = vadd.f32 %v1915_v27, %v1604_v57  ;;  %v618_v1 = vadd.f32 %v1916_v22, %v1607_v58 }
  0xb9   : > { %1177 = vpow2.f32 %v710_v60  ;;  %v648_v23 = vsub.f32 0.0, %v616_v14  ;;  %v619_v9 = vadd.f32 %v1917_v52, %v1610_v13  ;;  %v232_v15 = vsub.f32 %v208_v10, %v1537_v30 }
  0xba   : > { %v1168_v59 = vpop.eup %1167  ;;  %1179 = vpow2.f32 %v712_v12  ;;  %v649_v29 = vsub.f32 0.0, %v617_v5  ;;  %v650_v28 = vsub.f32 0.0, %v618_v1  ;;  %v233_v34 = vsub.f32 %v208_v10, %v1541_v36  ;;  %v341_v1 = vpop.permute.xlu2 %340 }
  0xbb   : > { %v1170_v16 = vpop.eup %1169  ;;  %765 = vmatpush.msra.mxu0 %v1168_v59  ;;  %1181 = vpow2.f32 %v714_v26  ;;  %v700_v57 = vmul.f32 1.442695, %v648_v23  ;;  %v651_v63 = vsub.f32 0.0, %v619_v9  ;;  %v234_v58 = vsub.f32 %v208_v10, %v1543_v48 }
  0xbc   : > { %v1172_v40 = vpop.eup %1171  ;;  %806 = vmatpush.msra.mxu1 %v1170_v16  ;;  %v702_v42 = vmul.f32 1.442695, %v649_v29  ;;  %v704_v13 = vmul.f32 1.442695, %v650_v28  ;;  %v235_v30 = vsub.f32 %v208_v10, %v1545_v49  ;;  %v248_v25 = vmul.f32 %v232_v15, %v232_v15 }
  0xbd   : > { %v1174_v0 = vpop.eup %1173  ;;  %847 = vmatpush.msra.mxu2 %v1172_v40  ;;  %1183 = vpow2.f32 %v700_v57  ;;  %v706_v60 = vmul.f32 1.442695, %v651_v63  ;;  %v249_v36 = vmul.f32 %v233_v34, %v233_v34  ;;  %v250_v12 = vmul.f32 %v234_v58, %v234_v58 }
  0xbe   : > { %v349_v56 = vpop.permute.xlu1 %348  ;;  %v1176_v26 = vpop.eup %1175  ;;  %888 = vmatpush.msra.mxu3 %v1174_v0  ;;  %v1723_v14 = vmul.f32 %v225_v24, %v225_v24  ;;  %v1725_v48 = vmul.f32 %v226_v17, %v226_v17  ;;  %1185 = vpow2.f32 %v702_v42  ;;  %v334_v27 = vmul.f32 0.83255464, %v1053_v31 }
  0xbf   : > { %v1178_v5 = vpop.eup %1177  ;;  %766 = vmatpush.msra.mxu0 %v1176_v26  ;;  %v1727_v22 = vmul.f32 %v227_v4, %v227_v4  ;;  %1187 = vpow2.f32 %v704_v13  ;;  %v251_v49 = vmul.f32 %v235_v30, %v235_v30  ;;  %v1730_v10 = vadd.f32 %v1617_v53, %v248_v25 }
  0xc0   : > { %v1180_v23 = vpop.eup %1179  ;;  %807 = vmatpush.msra.mxu1 %v1178_v5  ;;  %1189 = vpow2.f32 %v706_v60  ;;  %v1733_v24 = vadd.f32 %v1630_v32, %v249_v36  ;;  %v1735_v17 = vperm.slane %v334_v27, 0  ;;  %v1737_v52 = vperm.slane %v334_v27, 1 }
  0xc1   : > { %v1182_v9 = vpop.eup %1181  ;;  %848 = vmatpush.msra.mxu2 %v1180_v23  ;;  %v1740_v4 = vadd.f32 %v1632_v35, %v250_v12  ;;  %v1742_v15 = vperm.slane %v334_v27, 2  ;;  %v1744_v53 = vperm.slane %v334_v27, 3  ;;  %v320_v59 = vadd.f32 %v1636_v38, %v1663_v61 }
  0xc2   : > { %889 = vmatpush.msra.mxu3 %v1182_v9  ;;  %v321_v32 = vadd.f32 %v1641_v2, %v1666_v62  ;;  %v364_v29 = vsub.f32 %v341_v1, %v1735_v17  ;;  %v365_v28 = vsub.f32 %v341_v1, %v1737_v52  ;;  %v372_v34 = vsub.f32 %v349_v56, %v1735_v17 }
  0xc3   : > { %v1184_v16 = vpop.eup %1183  ;;  %v366_v35 = vsub.f32 %v341_v1, %v1742_v15  ;;  %v367_v57 = vsub.f32 %v341_v1, %v1744_v53  ;;  %v373_v63 = vsub.f32 %v349_v56, %v1737_v52  ;;  %v374_v58 = vsub.f32 %v349_v56, %v1742_v15 }
  0xc4   : > { %v1186_v38 = vpop.eup %1185  ;;  %767 = vmatpush.msra.mxu0 %v1184_v16  ;;  %v322_v2 = vadd.f32 %v1643_v3, %v1676_v6  ;;  %v380_v61 = vmul.f32 %v364_v29, %v364_v29  ;;  %v381_v62 = vmul.f32 %v365_v28, %v365_v28  ;;  %v375_v31 = vsub.f32 %v349_v56, %v1744_v53 }
  0xc5   : > { %v1188_v40 = vpop.eup %1187  ;;  %808 = vmatpush.msra.mxu1 %v1186_v38  ;;  %v1761_v42 = vadd.f32 %v1634_v37, %v251_v49  ;;  %v323_v13 = vadd.f32 %v1645_v7, %v1678_v33  ;;  %v382_v30 = vmul.f32 %v366_v35, %v366_v35  ;;  %v383_v25 = vmul.f32 %v367_v57, %v367_v57 }
  0xc6   : > { %v345_v0 = vpop.permute.xlu1 %344  ;;  %v1190_v60 = vpop.eup %1189  ;;  %849 = vmatpush.msra.mxu2 %v1188_v40  ;;  %v1765_v36 = vadd.f32 %v380_v61, %v320_v59  ;;  %v388_v3 = vmul.f32 %v372_v34, %v372_v34  ;;  %v389_v6 = vmul.f32 %v373_v63, %v373_v63  ;;  %v612_v12 = vadd.f32 %v1680_v54, %v1639_v39 }
  0xc7   : > { %890 = vmatpush.msra.mxu3 %v1190_v60  ;;  %v1769_v56 = vadd.f32 %v381_v62, %v321_v32  ;;  %v390_v37 = vmul.f32 %v374_v58, %v374_v58  ;;  %v613_v26 = vadd.f32 %v1685_v18, %v1648_v50  ;;  %v614_v7 = vadd.f32 %v1687_v19, %v1651_v8  ;;  %v337_v8 = vpop.permute.xlu0 %336 }
  0xc8   : > { %v1775_v33 = vadd.f32 %v382_v30, %v322_v2  ;;  %v391_v27 = vmul.f32 %v375_v31, %v375_v31  ;;  %v644_v5 = vsub.f32 0.0, %v612_v12  ;;  %v615_v49 = vadd.f32 %v1689_v20, %v1656_v11 }
  0xc9   : > { %v1779_v1 = vadd.f32 %v383_v25, %v323_v13  ;;  %v632_v39 = vsub.f32 0.0, %v1765_v36  ;;  %v645_v54 = vsub.f32 0.0, %v613_v26  ;;  %v646_v23 = vsub.f32 0.0, %v614_v7 }
  0xca   : > { %v692_v9 = vmul.f32 1.442695, %v644_v5  ;;  %v647_v59 = vsub.f32 0.0, %v615_v49  ;;  %v368_v50 = vsub.f32 %v345_v0, %v1735_v17  ;;  %v369_v18 = vsub.f32 %v345_v0, %v1737_v52 }
  0xcb   : > { %v633_v19 = vsub.f32 0.0, %v1769_v56  ;;  %v694_v32 = vmul.f32 1.442695, %v645_v54  ;;  %v696_v29 = vmul.f32 1.442695, %v646_v23  ;;  %v370_v28 = vsub.f32 %v345_v0, %v1742_v15 }
  0xcc   : > { %v634_v11 = vsub.f32 0.0, %v1775_v33  ;;  %1191 = vpow2.f32 %v692_v9  ;;  %v698_v20 = vmul.f32 1.442695, %v647_v59  ;;  %v371_v34 = vsub.f32 %v345_v0, %v1744_v53 }
  0xcd   : > { %v635_v16 = vsub.f32 0.0, %v1779_v1  ;;  %1193 = vpow2.f32 %v694_v32  ;;  %v384_v35 = vmul.f32 %v368_v50, %v368_v50  ;;  %v360_v57 = vsub.f32 %v337_v8, %v1735_v17 }
  0xce   : > { %1195 = vpow2.f32 %v696_v29  ;;  %v385_v63 = vmul.f32 %v369_v18, %v369_v18  ;;  %v386_v58 = vmul.f32 %v370_v28, %v370_v28  ;;  %v361_v38 = vsub.f32 %v337_v8, %v1737_v52 }
  0xcf   : > { %v261_v2 = vpop.permute.xlu1 %260  ;;  %1197 = vpow2.f32 %v698_v20  ;;  %v362_v61 = vsub.f32 %v337_v8, %v1742_v15  ;;  %v387_v40 = vmul.f32 %v371_v34, %v371_v34  ;;  %v363_v13 = vsub.f32 %v337_v8, %v1744_v53 }
  0xd0   : > { %v284_v62 = vsub.f32 %v261_v2, %v1488_v44  ;;  %v285_v31 = vsub.f32 %v261_v2, %v1490_v45  ;;  %v376_v30 = vmul.f32 %v360_v57, %v360_v57  ;;  %v286_v25 = vsub.f32 %v261_v2, %v1492_v46 }
  0xd1   : > { %v287_v17 = vsub.f32 %v261_v2, %v1494_v47  ;;  %v404_v52 = vadd.f32 %v388_v3, %v1683_v55  ;;  %v377_v26 = vmul.f32 %v361_v38, %v361_v38  ;;  %v405_v15 = vadd.f32 %v389_v6, %v1692_v21 }
  0xd2   : > { %v300_v0 = vmul.f32 %v284_v62, %v284_v62  ;;  %v301_v60 = vmul.f32 %v285_v31, %v285_v31  ;;  %v1192_v12 = vpop.eup %1191  ;;  %v406_v44 = vadd.f32 %v390_v37, %v1698_v41  ;;  %v407_v45 = vadd.f32 %v391_v27, %v1703_v51 }
  0xd3   : > { %v1194_v7 = vpop.eup %1193  ;;  %768 = vmatpush.msra.mxu0 %v1192_v12  ;;  %v378_v53 = vmul.f32 %v362_v61, %v362_v61  ;;  %v302_v5 = vmul.f32 %v286_v25, %v286_v25  ;;  %v303_v49 = vmul.f32 %v287_v17, %v287_v17  ;;  %v640_v46 = vsub.f32 0.0, %v404_v52  ;;  %v724_v12 = vld [vmem:[#allocation2] sm:$0xff] }
  0xd4   : > { %v1196_v54 = vpop.eup %1195  ;;  %809 = vmatpush.msra.mxu1 %v1194_v7  ;;  %v316_v47 = vadd.f32 %v300_v0, %v1710_v43  ;;  %v641_v23 = vsub.f32 0.0, %v405_v15  ;;  %v642_v55 = vsub.f32 0.0, %v406_v44  ;;  %v643_v3 = vsub.f32 0.0, %v407_v45  ;;  %v725_v7 = vld [vmem:[#allocation2 + $0x8] sm:$0xff] }
  0xd5   : > { %v1198_v9 = vpop.eup %1197  ;;  %850 = vmatpush.msra.mxu2 %v1196_v54  ;;  %v317_v21 = vadd.f32 %v301_v60, %v1723_v14  ;;  %v684_v41 = vmul.f32 1.442695, %v640_v46  ;;  %v400_v51 = vadd.f32 %v384_v35, %v1730_v10  ;;  %v401_v6 = vadd.f32 %v385_v63, %v1733_v24  ;;  %v729_v46 = vld [vmem:[#allocation2 + $0x28] sm:$0xff]  ;;  %v730_v54 = vld [vmem:[#allocation2 + $0x30] sm:$0xff] }
  0xd6   : > { %891 = vmatpush.msra.mxu3 %v1198_v9  ;;  %v686_v37 = vmul.f32 1.442695, %v641_v23  ;;  %v688_v27 = vmul.f32 1.442695, %v642_v55  ;;  %v690_v59 = vmul.f32 1.442695, %v643_v3  ;;  %v402_v50 = vadd.f32 %v386_v58, %v1740_v4 }
  0xd7   : > { %1199 = vpow2.f32 %v684_v41  ;;  %v636_v43 = vsub.f32 0.0, %v400_v51  ;;  %v637_v18 = vsub.f32 0.0, %v401_v6  ;;  %v403_v8 = vadd.f32 %v387_v40, %v1761_v42 }
  0xd8   : > { %v318_v32 = vadd.f32 %v302_v5, %v1725_v48  ;;  %v319_v14 = vadd.f32 %v303_v49, %v1727_v22  ;;  %1201 = vpow2.f32 %v686_v37  ;;  %v638_v29 = vsub.f32 0.0, %v402_v50  ;;  %v727_v5 = vld [vmem:[#allocation2 + $0x18] sm:$0xff]  ;;  %v728_v49 = vld [vmem:[#allocation2 + $0x20] sm:$0xff] }
  0xd9   : > { %1203 = vpow2.f32 %v688_v27  ;;  %v676_v10 = vmul.f32 1.442695, %v636_v43  ;;  %v678_v24 = vmul.f32 1.442695, %v637_v18  ;;  %v639_v28 = vsub.f32 0.0, %v403_v8 }
  0xda   : > { %v379_v20 = vmul.f32 %v363_v13, %v363_v13  ;;  %1205 = vpow2.f32 %v690_v59  ;;  %v680_v34 = vmul.f32 1.442695, %v638_v29  ;;  %v668_v4 = vmul.f32 1.442695, %v632_v39 }
  0xdb   : > { %1207 = vpow2.f32 %v676_v10  ;;  %v682_v35 = vmul.f32 1.442695, %v639_v28  ;;  %v392_v57 = vadd.f32 %v376_v30, %v316_v47  ;;  %v393_v42 = vadd.f32 %v377_v26, %v317_v21  ;;  %v731_v47 = vld [vmem:[#allocation2 + $0x38] sm:$0xff] }
  0xdc   : > { %1209 = vpow2.f32 %v678_v24  ;;  %v670_v48 = vmul.f32 1.442695, %v633_v19  ;;  %v394_v22 = vadd.f32 %v378_v53, %v318_v32  ;;  %v395_v63 = vadd.f32 %v379_v20, %v319_v14  ;;  %v726_v53 = vld [vmem:[#allocation2 + $0x10] sm:$0xff] }
  0xdd   : > { %v1200_v58 = vpop.eup %1199  ;;  %1211 = vpow2.f32 %v680_v34  ;;  %v672_v38 = vmul.f32 1.442695, %v634_v11  ;;  %v628_v2 = vsub.f32 0.0, %v392_v57  ;;  %v629_v61 = vsub.f32 0.0, %v393_v42 }
  0xde   : > { %v1202_v62 = vpop.eup %1201  ;;  %769 = vmatpush.msra.mxu0 %v1200_v58  ;;  %1213 = vpow2.f32 %v682_v35  ;;  %v674_v36 = vmul.f32 1.442695, %v635_v16  ;;  %v630_v39 = vsub.f32 0.0, %v394_v22  ;;  %v631_v31 = vsub.f32 0.0, %v395_v63 }
  0xdf   : > { %v1204_v40 = vpop.eup %1203  ;;  %810 = vmatpush.msra.mxu1 %v1202_v62  ;;  %1215 = vpow2.f32 %v668_v4  ;;  %v660_v56 = vmul.f32 1.442695, %v628_v2  ;;  %v662_v13 = vmul.f32 1.442695, %v629_v61 }
  0xe0   : > { %v1206_v19 = vpop.eup %1205  ;;  %851 = vmatpush.msra.mxu2 %v1204_v40  ;;  %1217 = vpow2.f32 %v670_v48  ;;  %v664_v11 = vmul.f32 1.442695, %v630_v39  ;;  %v666_v25 = vmul.f32 1.442695, %v631_v31 }
  0xe1   : > { %v1208_v33 = vpop.eup %1207  ;;  %892 = vmatpush.msra.mxu3 %v1206_v19  ;;  %1219 = vpow2.f32 %v672_v38 }
  0xe2   : > { %v1210_v30 = vpop.eup %1209  ;;  %770 = vmatpush.msra.mxu0 %v1208_v33  ;;  %1221 = vpow2.f32 %v674_v36 }
  0xe3   : > { %v1212_v1 = vpop.eup %1211  ;;  %811 = vmatpush.msra.mxu1 %v1210_v30  ;;  %1223 = vpow2.f32 %v660_v56 }
  0xe4   : > { %v1214_v16 = vpop.eup %1213  ;;  %852 = vmatpush.msra.mxu2 %v1212_v1  ;;  %1225 = vpow2.f32 %v662_v13 }
  0xe5   : > { %v1216_v17 = vpop.eup %1215  ;;  %893 = vmatpush.msra.mxu3 %v1214_v16  ;;  %1227 = vpow2.f32 %v664_v11 }
  0xe6   : > { %v1218_v0 = vpop.eup %1217  ;;  %771 = vmatpush.msra.mxu0 %v1216_v17  ;;  %1229 = vpow2.f32 %v666_v25 }
  0xe7   : > { %v1220_v60 = vpop.eup %1219  ;;  %812 = vmatpush.msra.mxu1 %v1218_v0 }
  0xe8   : > { %v1222_v52 = vpop.eup %1221  ;;  %853 = vmatpush.msra.mxu2 %v1220_v60 }
  0xe9   : > { %v1224_v26 = vpop.eup %1223  ;;  %894 = vmatpush.msra.mxu3 %v1222_v52 }
  0xea   : > { %v1226_v15 = vpop.eup %1225  ;;  %772 = vmatpush.msra.mxu0 %v1224_v26 }
  0xeb   : > { %v1228_v44 = vpop.eup %1227  ;;  %813 = vmatpush.msra.mxu1 %v1226_v15  ;;  %1057 = vmatmul.msk.f32.vlgmr.msra.gmra.mxu0 %vm732_vm0, %v724_v12 }
  0xec   : > { %v1230_v45 = vpop.eup %1229  ;;  %854 = vmatpush.msra.mxu2 %v1228_v44  ;;  %1065 = vmatmul.msk.f32.vlgmr.msra.gmra.mxu1 %vm732_vm0, %v724_v12 }
  0xed   : > { %895 = vmatpush.msra.mxu3 %v1230_v45  ;;  %1073 = vmatmul.msk.f32.vlgmr.msra.gmra.mxu2 %vm732_vm0, %v724_v12 }
  0xee   : > { %1081 = vmatmul.msk.f32.vlgmr.msra.gmra.mxu3 %vm732_vm0, %v724_v12 }
  0xf3   : > { %1058 = vmatmul.msk.f32.gmra.mxu0 %vm732_vm0, %v725_v7 }
  0xf4   : > { %1066 = vmatmul.msk.f32.gmra.mxu1 %vm732_vm0, %v725_v7 }
  0xf5   : > { %1074 = vmatmul.msk.f32.gmra.mxu2 %vm732_vm0, %v725_v7 }
  0xf6   : > { %1082 = vmatmul.msk.f32.gmra.mxu3 %vm732_vm0, %v725_v7 }
  0xfb   : > { %1059 = vmatmul.msk.f32.gmra.mxu0 %vm732_vm0, %v726_v53 }
  0xfc   : > { %1067 = vmatmul.msk.f32.gmra.mxu1 %vm732_vm0, %v726_v53 }
  0xfd   : > { %1075 = vmatmul.msk.f32.gmra.mxu2 %vm732_vm0, %v726_v53 }
  0xfe   : > { %1083 = vmatmul.msk.f32.gmra.mxu3 %vm732_vm0, %v726_v53 }
 0x103   : > { %1060 = vmatmul.msk.f32.gmra.mxu0 %vm732_vm0, %v727_v5 }
 0x104   : > { %1068 = vmatmul.msk.f32.gmra.mxu1 %vm732_vm0, %v727_v5 }
 0x105   : > { %1076 = vmatmul.msk.f32.gmra.mxu2 %vm732_vm0, %v727_v5 }
 0x106   : > { %1084 = vmatmul.msk.f32.gmra.mxu3 %vm732_vm0, %v727_v5 }
 0x10b   : > { %1061 = vmatmul.msk.f32.gmra.mxu0 %vm732_vm0, %v728_v49 }
 0x10c   : > { %1069 = vmatmul.msk.f32.gmra.mxu1 %vm732_vm0, %v728_v49 }
 0x10d   : > { %1077 = vmatmul.msk.f32.gmra.mxu2 %vm732_vm0, %v728_v49 }
 0x10e   : > { %1085 = vmatmul.msk.f32.gmra.mxu3 %vm732_vm0, %v728_v49 }
 0x113   : > { %1062 = vmatmul.msk.f32.gmra.mxu0 %vm732_vm0, %v729_v46 }
 0x114   : > { %1070 = vmatmul.msk.f32.gmra.mxu1 %vm732_vm0, %v729_v46 }
 0x115   : > { %1078 = vmatmul.msk.f32.gmra.mxu2 %vm732_vm0, %v729_v46 }
 0x116   : > { %1086 = vmatmul.msk.f32.gmra.mxu3 %vm732_vm0, %v729_v46 }
 0x11b   : > { %1063 = vmatmul.msk.f32.gmra.mxu0 %vm732_vm0, %v730_v54 }
 0x11c   : > { %1071 = vmatmul.msk.f32.gmra.mxu1 %vm732_vm0, %v730_v54 }
 0x11d   : > { %1079 = vmatmul.msk.f32.gmra.mxu2 %vm732_vm0, %v730_v54 }
 0x11e   : > { %1087 = vmatmul.msk.f32.gmra.mxu3 %vm732_vm0, %v730_v54 }
 0x123   : > { %1064 = vmatmul.msk.f32.gmra.mxu0 %vm732_vm0, %v731_v47 }
 0x124   : > { %1072 = vmatmul.msk.f32.gmra.mxu1 %vm732_vm0, %v731_v47 }
 0x125   : > { %1080 = vmatmul.msk.f32.gmra.mxu2 %vm732_vm0, %v731_v47 }
 0x126   : > { %1088 = vmatmul.msk.f32.gmra.mxu3 %vm732_vm0, %v731_v47 }
 0x168   : > { %v774_v23 = vpop.f32.mrf.mxu0 }
 0x169   : > { %v815_v55 = vpop.f32.mrf.mxu1 }
 0x170   : > { %v856_v3 = vpop.f32.mrf.mxu2  ;;  %v777_v9 = vpop.f32.mrf.mxu0 }
 0x171   : > { %v897_v21 = vpop.f32.mrf.mxu3  ;;  %v818_v41 = vpop.f32.mrf.mxu1 }
 0x178   : > { %v859_v51 = vpop.f32.mrf.mxu2  ;;  %v780_v6 = vpop.f32.mrf.mxu0 }
 0x179   : > { %v900_v37 = vpop.f32.mrf.mxu3  ;;  %v821_v27 = vpop.f32.mrf.mxu1 }
 0x180   : > { %v862_v59 = vpop.f32.mrf.mxu2  ;;  %v783_v50 = vpop.f32.mrf.mxu0 }
 0x181   : > { %v903_v43 = vpop.f32.mrf.mxu3  ;;  %v824_v18 = vpop.f32.mrf.mxu1 }
 0x188   : > { %v865_v8 = vpop.f32.mrf.mxu2  ;;  %v786_v32 = vpop.f32.mrf.mxu0 }
 0x189   : > { %v906_v14 = vpop.f32.mrf.mxu3  ;;  %v921_v29 = vmul.f32 %v786_v32, %v774_v23  ;;  %v827_v10 = vpop.f32.mrf.mxu1 }
 0x18a   : > { %v922_v24 = vmul.f32 %v827_v10, %v815_v55 }
 0x18b   : > { %937 = vst [vmem:[%s1852_s9] sm:$0xff] %v921_v29 }
 0x18c   : > { %938 = vst [vmem:[%s1852_s9 + $0x8] sm:$0xff] %v922_v24 }
 0x190   : > { %v868_v28 = vpop.f32.mrf.mxu2  ;;  %v789_v20 = vpop.f32.mrf.mxu0 }
 0x191   : > { %v923_v34 = vmul.f32 %v868_v28, %v856_v3  ;;  %v909_v4 = vpop.f32.mrf.mxu3  ;;  %v925_v35 = vmul.f32 %v789_v20, %v777_v9  ;;  %v830_v57 = vpop.f32.mrf.mxu1 }
 0x192   : > { %v924_v42 = vmul.f32 %v909_v4, %v897_v21  ;;  %v926_v48 = vmul.f32 %v830_v57, %v818_v41 }
 0x193   : > { %939 = vst [vmem:[%s1852_s9 + $0x10] sm:$0xff] %v923_v34 }
 0x194   : > { %940 = vst [vmem:[%s1852_s9 + $0x18] sm:$0xff] %v924_v42 }
 0x195   : > { %941 = vst [vmem:[%s1852_s9 + $0x20] sm:$0xff] %v925_v35 }
 0x196   : > { %942 = vst [vmem:[%s1852_s9 + $0x28] sm:$0xff] %v926_v48 }
 0x198   : > { %v871_v22 = vpop.f32.mrf.mxu2  ;;  %v792_v63 = vpop.f32.mrf.mxu0 }
 0x199   : > { %v927_v58 = vmul.f32 %v871_v22, %v859_v51  ;;  %v912_v38 = vpop.f32.mrf.mxu3  ;;  %v929_v2 = vmul.f32 %v792_v63, %v780_v6  ;;  %v833_v61 = vpop.f32.mrf.mxu1 }
 0x19a   : > { %v928_v62 = vmul.f32 %v912_v38, %v900_v37  ;;  %v930_v36 = vmul.f32 %v833_v61, %v821_v27 }
 0x19b   : > { %943 = vst [vmem:[%s1852_s9 + $0x30] sm:$0xff] %v927_v58 }
 0x19c   : > { %944 = vst [vmem:[%s1852_s9 + $0x38] sm:$0xff] %v928_v62 }
 0x19d   : > { %945 = vst [vmem:[%s1852_s9 + $0x40] sm:$0xff] %v929_v2 }
 0x19e   : > { %946 = vst [vmem:[%s1852_s9 + $0x48] sm:$0xff] %v930_v36 }
 0x1a0   : > { %v874_v39 = vpop.f32.mrf.mxu2  ;;  %v795_v31 = vpop.f32.mrf.mxu0 }
 0x1a1   : > { %v931_v40 = vmul.f32 %v874_v39, %v862_v59  ;;  %v915_v56 = vpop.f32.mrf.mxu3  ;;  %v933_v19 = vmul.f32 %v795_v31, %v783_v50  ;;  %v836_v13 = vpop.f32.mrf.mxu1 }
 0x1a2   : > { %v932_v33 = vmul.f32 %v915_v56, %v903_v43  ;;  %v934_v11 = vmul.f32 %v836_v13, %v824_v18 }
 0x1a3   : > { %947 = vst [vmem:[%s1852_s9 + $0x50] sm:$0xff] %v931_v40 }
 0x1a4   : > { %948 = vst [vmem:[%s1852_s9 + $0x58] sm:$0xff] %v932_v33 }
 0x1a5   : > { %949 = vst [vmem:[%s1852_s9 + $0x60] sm:$0xff] %v933_v19 }
 0x1a6   : > { %950 = vst [vmem:[%s1852_s9 + $0x68] sm:$0xff] %v934_v11 }
 0x1a8   : > { %v877_v30 = vpop.f32.mrf.mxu2 }
 0x1a9   : > { %v935_v25 = vmul.f32 %v877_v30, %v865_v8  ;;  %v918_v1 = vpop.f32.mrf.mxu3 }
 0x1aa   : > { %v936_v16 = vmul.f32 %v918_v1, %v906_v14 }
 0x1ab   : > { %951 = vst [vmem:[%s1852_s9 + $0x70] sm:$0xff] %v935_v25 }
 0x1ac   : > { %952 = vst [vmem:[%s1852_s9 + $0x78] sm:$0xff] %v936_v16 }
 0x1ad   : > { %1288 = shalt.err (!%p1285_p8)
}
 0x1ae   : > { %s1335_s5 = smov 512   ;;  %s1336_s6 = smov 1024  }
 0x1af   : > { %s1337_s7 = smov 32  }
 0x1b0   : > { %1099 = dma.vmem_to_hbm [thread:$0]  (%p1396_p5), %s967_s20, 2048, %s969_s16, %s954_s24, %s1335_s5, %s1336_s6, %s1337_s7  }
 0x1b1 PF: > { %p1111_p9 = scmp.ge.s32.totalorder %s1327_s15, 2  ;;  %s983_s8 = sand.u32 1, %s1315_s12  }
 0x1b2   : > { %s984_s9 = scalar_lea.sflag [#allocation4], %s983_s8 }
 0x1b3   : > { %p1106_p10 = pnand %p1111_p9, %p1400_p6 }
 0x1b5   : > { %p1107_p11 = pneg %p1106_p10 }
 0x1b7   : > { %1310 = dma.done.wait (%p1107_p11), %s984_s9, 2048  }
 0x1b8   : > { %1312 = vsyncadd (%p1107_p11), %s984_s9, 4294965248  ;;  %p14_p12 = scmp.ge.s32.totalorder %s1383_s18, 4   ;;  %s1918_s12 = smov %s1319_s13 }
 0x1b9   : > { %s1919_s13 = smov %s1323_s14  ;;  %s1920_s14 = smov %s1394_s21 }
 0x1ba   : > { %s1921_s15 = smov %s1383_s18  ;;  %16 = sbr.rel (!%p14_p12) target bundleno = 4 (0x4), region = 77 }
 0x1bf   :  { %990 = vsyncpa [#allocation3], 1 }
 0x1c0   :  { %992 = vsyncpa [#allocation3 + $0x1], 1 }
 0x1c1   :  { %993 = vsyncpa [#allocation4], 1 }
 0x1c2   :  { %995 = vsyncpa [#allocation4 + $0x1], 1 }

</bundles_post_ra>
